<compile_context>
chip_gen: v5e
topology: v5e:2x2
jax: 0.10.0
libtpu: 0.0.40
codegen_flags: <defaults>
</compile_context>

<pallas_src>
import math

import jax
import jax.numpy as jnp
from jax.experimental import pallas as pl
from jax.experimental.pallas import tpu as pltpu


# ----------------------------- config (T5Config) ----------------------------
D_MODEL = 32          # config.d_model
D_KV = 8              # config.d_kv
N_HEADS = 4           # config.num_heads
INNER_DIM = N_HEADS * D_KV
NUM_BUCKETS = 32      # config.relative_attention_num_buckets
IS_DECODER = False    # config.is_decoder
BATCH = 2
SEQ = 8


# --------------------- relative position bias (plain-JAX glue) --------------
def _relative_position_bucket(relative_position, bidirectional=True,
                              num_buckets=32, max_distance=128):
    relative_buckets = jnp.zeros_like(relative_position)
    if bidirectional:
        num_buckets //= 2
        relative_buckets = relative_buckets + (
            (relative_position > 0).astype(jnp.int32) * num_buckets)
        relative_position = jnp.abs(relative_position)
    else:
        relative_position = -jnp.minimum(relative_position,
                                         jnp.zeros_like(relative_position))
    max_exact = num_buckets // 2
    is_small = relative_position < max_exact
    # Guard against log(0): rel_pos==0 entries always take the is_small branch,
    # the guard only avoids an implementation-defined -inf -> int32 cast.
    safe_rel = jnp.maximum(relative_position, 1)
    rp_if_large = max_exact + (
        jnp.log(safe_rel.astype(jnp.float32) / max_exact)
        / math.log(max_distance / max_exact)
        * (num_buckets - max_exact)).astype(jnp.int32)
    rp_if_large = jnp.minimum(rp_if_large, num_buckets - 1)
    relative_buckets = relative_buckets + jnp.where(
        is_small, relative_position, rp_if_large)
    return relative_buckets


def compute_bias(rel_attn_bias_table, query_length, key_length):
    """rel_attn_bias_table: (num_buckets, n_heads) -> (n_heads, q_len, k_len)"""
    context_position = jnp.arange(query_length, dtype=jnp.int32)[:, None]
    memory_position = jnp.arange(key_length, dtype=jnp.int32)[None, :]
    relative_position = memory_position - context_position
    buckets = _relative_position_bucket(
        relative_position, bidirectional=not IS_DECODER,
        num_buckets=NUM_BUCKETS)
    values = rel_attn_bias_table[buckets]          # (q, k, H)
    return jnp.transpose(values, (2, 0, 1))        # (H, q, k)


# ------------------------------ Pallas kernel --------------------------------
def sparse_t5_attention_kernel(h_ref, wqkv_ref, wo_ref, bias_ref, o_ref):
    # h_ref:    (S, D)         one batch element (batch dim squeezed by BlockSpec)
    # wqkv_ref: (D, 3*INNER)   fused [Wq | Wk | Wv] (pre-fused outside hot path)
    # wo_ref:   (INNER, D)
    # bias_ref: (H, S, S)      relative position bias (shared across batch)
    # o_ref:    (S, D)
    h = h_ref[...]                                                   # (S, D)

    # single fused QKV projection (one MXU matmul instead of three)
    qkv = jnp.dot(h, wqkv_ref[...], preferred_element_type=jnp.float32)
    s = qkv.shape[0]

    # split heads once, keep them batched (no per-head 8-lane slicing loop)
    q = jnp.transpose(qkv[:, 0 * INNER_DIM:1 * INNER_DIM]
                      .reshape(s, N_HEADS, D_KV), (1, 0, 2))         # (H, S, d)
    k = jnp.transpose(qkv[:, 1 * INNER_DIM:2 * INNER_DIM]
                      .reshape(s, N_HEADS, D_KV), (1, 0, 2))         # (H, S, d)
    v = jnp.transpose(qkv[:, 2 * INNER_DIM:3 * INNER_DIM]
                      .reshape(s, N_HEADS, D_KV), (1, 0, 2))         # (H, S, d)

    # head-batched scores: contraction on the last dim (no explicit k.T),
    # T5 style (no 1/sqrt(d) scaling), bias added in float32.
    scores = jnp.einsum('hqd,hkd->hqk', q, k,
                        preferred_element_type=jnp.float32)          # (H, S, S)
    scores = scores + bias_ref[...]

    # softmax over keys in float32, exact divide (parity with torch softmax)
    scores = scores - jnp.max(scores, axis=-1, keepdims=True)
    p = jnp.exp(scores)
    attn = p / jnp.sum(p, axis=-1, keepdims=True)

    # head-batched context, then fold heads back: (H,S,d) -> (S,H,d) -> (S,I)
    ctx = jnp.einsum('hqk,hkd->hqd', attn, v,
                     preferred_element_type=jnp.float32)             # (H, S, d)
    ctx = jnp.transpose(ctx, (1, 0, 2)).reshape(s, INNER_DIM)

    # single output projection
    out = jnp.dot(ctx, wo_ref[...], preferred_element_type=jnp.float32)
    # NOTE: D=32 < 128 -> masked vst at this toy d_model; lane-dense at real
    # d_model (512+), so accepted for the test config.
    o_ref[...] = out.astype(o_ref.dtype)


def sparse_t5_attention(hidden_states, w_qkv, wo_t, position_bias):
    """hidden_states: (B, S, D); w_qkv: (D, 3*INNER); wo_t: (INNER, D);
    position_bias: (H, S, S)."""
    B, S, D = hidden_states.shape
    H = position_bias.shape[0]

    out = pl.pallas_call(
        sparse_t5_attention_kernel,
        out_shape=jax.ShapeDtypeStruct((B, S, D), hidden_states.dtype),
        grid=(B,),                                  # batch = parallel grid axis
        in_specs=[
            # leading batch dim squeezed -> kernel sees (S, D)
            pl.BlockSpec((None, S, D), lambda b: (b, 0, 0)),
            pl.BlockSpec((D, 3 * INNER_DIM), lambda b: (0, 0)),
            pl.BlockSpec((INNER_DIM, D), lambda b: (0, 0)),
            # bias shared by every batch step: O(H*S^2), no B^2 inflation
            pl.BlockSpec((H, S, S), lambda b: (0, 0, 0)),
        ],
        out_specs=pl.BlockSpec((None, S, D), lambda b: (b, 0, 0)),
        compiler_params=pltpu.CompilerParams(
            # batch axis is independent -> shards across TCs on v7x megacore
            dimension_semantics=("parallel",)),
    )(hidden_states, w_qkv, wo_t, position_bias)

    return out


# ------------------------------ pure-JAX reference ---------------------------
def reference_forward(hidden_states, wq_t, wk_t, wv_t, wo_t, position_bias):
    B, S, D = hidden_states.shape

    def shape(x):  # (B, S, INNER) -> (B, H, S, d_kv)
        return jnp.transpose(x.reshape(B, S, N_HEADS, D_KV), (0, 2, 1, 3))

    q = shape(hidden_states @ wq_t)
    k = shape(hidden_states @ wk_t)
    v = shape(hidden_states @ wv_t)
    scores = jnp.einsum("bhqd,bhkd->bhqk", q, k) + position_bias[None]
    attn = jax.nn.softmax(scores.astype(jnp.float32), axis=-1)
    ctx = jnp.einsum("bhqk,bhkd->bhqd", attn, v)
    ctx = jnp.transpose(ctx, (0, 2, 1, 3)).reshape(B, S, INNER_DIM)
    return ctx @ wo_t


# ----------------------------------- main ------------------------------------
if __name__ == "__main__":
    key = jax.random.PRNGKey(0)
    k_h, k_q, k_k, k_v, k_o, k_b = jax.random.split(key, 6)

    hidden = jax.random.normal(k_h, (BATCH, SEQ, D_MODEL), jnp.float32)

    # torch nn.Linear weights are (out, in); store pre-transposed (in, out).
    wq_t = jax.random.normal(k_q, (D_MODEL, INNER_DIM), jnp.float32) * 0.05
    wk_t = jax.random.normal(k_k, (D_MODEL, INNER_DIM), jnp.float32) * 0.05
    wv_t = jax.random.normal(k_v, (D_MODEL, INNER_DIM), jnp.float32) * 0.05
    wo_t = jax.random.normal(k_o, (INNER_DIM, D_MODEL), jnp.float32) * 0.05

    # Pre-fuse QKV weights ONCE, outside the per-call hot path.
    w_qkv = jnp.concatenate([wq_t, wk_t, wv_t], axis=1)    # (D, 3*INNER)

    # relative_attention_bias embedding table: (num_buckets, n_heads)
    rel_bias_table = jax.random.normal(
        k_b, (NUM_BUCKETS, N_HEADS), jnp.float32) * 0.1

    # position bias (self-attention, no past state, no mask, identity head idx)
    position_bias = compute_bias(rel_bias_table, SEQ, SEQ)   # (H, S, S)

    out = sparse_t5_attention(hidden, w_qkv, wo_t, position_bias)
    out = jax.block_until_ready(out)

    ref = reference_forward(hidden, wq_t, wk_t, wv_t, wo_t, position_bias)
    assert out.shape == (BATCH, SEQ, D_MODEL)
    assert jnp.allclose(out, ref, atol=1e-5, rtol=1e-5), "mismatch vs reference"

    # TODO(synk): sparsified (< n_heads) zero-output branch, past_key_value /
    # cross-attention caching, layer_head_mask and training-time dropout are
    # host-side control flow over cached tensors; only the dense
    # self-attention hot path is in the kernel.
    print("KERNEL_OK")
</pallas_src>

<mosaic_0001>
module attributes {stable_mosaic.version = 11 : i64} {
  func.func @sparse_t5_attention_kernel(%arg0: i32, %arg1: memref<1x8x32xf32, #tpu.memory_space<vmem>>, %arg2: memref<32x96xf32, #tpu.memory_space<vmem>>, %arg3: memref<32x32xf32, #tpu.memory_space<vmem>>, %arg4: memref<4x8x8xf32, #tpu.memory_space<vmem>>, %arg5: memref<1x8x32xf32, #tpu.memory_space<vmem>>) attributes {dimension_semantics = [#tpu.dimension_semantics<parallel>], iteration_bounds = array<i64: 2>, scalar_prefetch = 0 : i64, scratch_operands = 0 : i64, tpu.core_type = #tpu.core_type<tc>, window_params = [{transform_indices = @transform_0, window_bounds = array<i64: 1, 8, 32>}, {pipeline_mode = #tpu.pipeline_mode<synchronous>, transform_indices = @transform_1, window_bounds = array<i64: 32, 96>}, {pipeline_mode = #tpu.pipeline_mode<synchronous>, transform_indices = @transform_2, window_bounds = array<i64: 32, 32>}, {pipeline_mode = #tpu.pipeline_mode<synchronous>, transform_indices = @transform_3, window_bounds = array<i64: 4, 8, 8>}, {transform_indices = @transform_4, window_bounds = array<i64: 1, 8, 32>}]} {
    %c0 = arith.constant 0 : index
    %c0_0 = arith.constant 0 : index
    %c0_1 = arith.constant 0 : index
    %0 = vector.load %arg1[%c0, %c0_0, %c0_1] : memref<1x8x32xf32, #tpu.memory_space<vmem>>, vector<1x8x32xf32>
    %1 = vector.shape_cast %0 : vector<1x8x32xf32> to vector<8x32xf32>
    %c0_2 = arith.constant 0 : index
    %c0_3 = arith.constant 0 : index
    %2 = vector.load %arg2[%c0_2, %c0_3] : memref<32x96xf32, #tpu.memory_space<vmem>>, vector<32x96xf32>
    %cst = arith.constant dense<0.000000e+00> : vector<8x96xf32>
    %3 = tpu.matmul %1, %2, %cst {dimension_numbers = #tpu.dot_dimension_numbers<[1], [0], [0], [1], [0, 0, 1, 1], [], []>} : vector<8x32xf32>, vector<32x96xf32>, vector<8x96xf32> -> vector<8x96xf32>
    %4 = vector.extract_strided_slice %3 {offsets = [0, 0], sizes = [8, 32], strides = [1, 1]} : vector<8x96xf32> to vector<8x32xf32>
    %5 = vector.shape_cast %4 : vector<8x32xf32> to vector<8x4x8xf32>
    %6 = tpu.transpose %5, [1, 0, 2] : vector<8x4x8xf32> -> vector<4x8x8xf32>
    %7 = vector.extract_strided_slice %3 {offsets = [0, 32], sizes = [8, 32], strides = [1, 1]} : vector<8x96xf32> to vector<8x32xf32>
    %8 = vector.shape_cast %7 : vector<8x32xf32> to vector<8x4x8xf32>
    %9 = tpu.transpose %8, [1, 0, 2] : vector<8x4x8xf32> -> vector<4x8x8xf32>
    %10 = vector.extract_strided_slice %3 {offsets = [0, 64], sizes = [8, 32], strides = [1, 1]} : vector<8x96xf32> to vector<8x32xf32>
    %11 = vector.shape_cast %10 : vector<8x32xf32> to vector<8x4x8xf32>
    %12 = tpu.transpose %11, [1, 0, 2] : vector<8x4x8xf32> -> vector<4x8x8xf32>
    "tpu.trace_start"() <{level = 10 : i32, message = "hqd,hkd->hqk"}> : () -> ()
    %cst_4 = arith.constant dense<0.000000e+00> : vector<4x8x8xf32>
    %13 = tpu.matmul %6, %9, %cst_4 {dimension_numbers = #tpu.dot_dimension_numbers<[2], [2], [1], [1], [0, 0, 0, 1, 1, 1], [0], [0]>} : vector<4x8x8xf32>, vector<4x8x8xf32>, vector<4x8x8xf32> -> vector<4x8x8xf32>
    "tpu.trace_stop"() : () -> ()
    %c0_5 = arith.constant 0 : index
    %c0_6 = arith.constant 0 : index
    %c0_7 = arith.constant 0 : index
    %14 = vector.load %arg4[%c0_5, %c0_6, %c0_7] : memref<4x8x8xf32, #tpu.memory_space<vmem>>, vector<4x8x8xf32>
    %15 = arith.addf %13, %14 : vector<4x8x8xf32>
    %cst_8 = arith.constant dense<0xFF800000> : vector<4x8xf32>
    %16 = vector.multi_reduction <maximumf>, %15, %cst_8 [2] : vector<4x8x8xf32> to vector<4x8xf32>
    %17 = vector.shape_cast %16 : vector<4x8xf32> to vector<4x8x1xf32>
    %18 = vector.broadcast %17 : vector<4x8x1xf32> to vector<4x8x8xf32>
    %19 = arith.subf %15, %18 : vector<4x8x8xf32>
    %20 = math.exp %19 : vector<4x8x8xf32>
    %cst_9 = arith.constant dense<0.000000e+00> : vector<4x8xf32>
    %21 = vector.multi_reduction <add>, %20, %cst_9 [2] : vector<4x8x8xf32> to vector<4x8xf32>
    %22 = vector.shape_cast %21 : vector<4x8xf32> to vector<4x8x1xf32>
    %23 = vector.broadcast %22 : vector<4x8x1xf32> to vector<4x8x8xf32>
    %24 = arith.divf %20, %23 : vector<4x8x8xf32>
    "tpu.trace_start"() <{level = 10 : i32, message = "hqk,hkd->hqd"}> : () -> ()
    %cst_10 = arith.constant dense<0.000000e+00> : vector<4x8x8xf32>
    %25 = tpu.matmul %24, %12, %cst_10 {dimension_numbers = #tpu.dot_dimension_numbers<[2], [1], [1], [2], [0, 0, 0, 1, 1, 2], [0], [0]>} : vector<4x8x8xf32>, vector<4x8x8xf32>, vector<4x8x8xf32> -> vector<4x8x8xf32>
    "tpu.trace_stop"() : () -> ()
    %26 = tpu.transpose %25, [1, 0, 2] : vector<4x8x8xf32> -> vector<8x4x8xf32>
    %27 = vector.shape_cast %26 : vector<8x4x8xf32> to vector<8x32xf32>
    %c0_11 = arith.constant 0 : index
    %c0_12 = arith.constant 0 : index
    %28 = vector.load %arg3[%c0_11, %c0_12] : memref<32x32xf32, #tpu.memory_space<vmem>>, vector<32x32xf32>
    %cst_13 = arith.constant dense<0.000000e+00> : vector<8x32xf32>
    %29 = tpu.matmul %27, %28, %cst_13 {dimension_numbers = #tpu.dot_dimension_numbers<[1], [0], [0], [1], [0, 0, 1, 1], [], []>} : vector<8x32xf32>, vector<32x32xf32>, vector<8x32xf32> -> vector<8x32xf32>
    %c0_14 = arith.constant 0 : index
    %c0_15 = arith.constant 0 : index
    %c0_16 = arith.constant 0 : index
    %30 = vector.load %arg5[%c0_14, %c0_15, %c0_16] : memref<1x8x32xf32, #tpu.memory_space<vmem>>, vector<1x8x32xf32>
    %31 = vector.shape_cast %30 : vector<1x8x32xf32> to vector<8x32xf32>
    %32 = vector.shape_cast %29 : vector<8x32xf32> to vector<1x8x32xf32>
    tpu.vector_store %arg5[%c0_14, %c0_15, %c0_16], %32 {strides = array<i32>} : memref<1x8x32xf32, #tpu.memory_space<vmem>>, vector<1x8x32xf32>,
    return
  }
  func.func @transform_0(%arg0: i32) -> (i32, i32, i32) {
    %c0_i32 = arith.constant 0 : i32
    %c0_i32_0 = arith.constant 0 : i32
    %c0_i32_1 = arith.constant 0 : i32
    return %arg0, %c0_i32, %c0_i32_0 : i32, i32, i32
  }
  func.func @transform_1(%arg0: i32) -> (i32, i32) {
    %c0_i32 = arith.constant 0 : i32
    %c0_i32_0 = arith.constant 0 : i32
    %c0_i32_1 = arith.constant 0 : i32
    return %c0_i32, %c0_i32_0 : i32, i32
  }
  func.func @transform_2(%arg0: i32) -> (i32, i32) {
    %c0_i32 = arith.constant 0 : i32
    %c0_i32_0 = arith.constant 0 : i32
    %c0_i32_1 = arith.constant 0 : i32
    return %c0_i32, %c0_i32_0 : i32, i32
  }
  func.func @transform_3(%arg0: i32) -> (i32, i32, i32) {
    %c0_i32 = arith.constant 0 : i32
    %c0_i32_0 = arith.constant 0 : i32
    %c0_i32_1 = arith.constant 0 : i32
    %c0_i32_2 = arith.constant 0 : i32
    return %c0_i32, %c0_i32_0, %c0_i32_1 : i32, i32, i32
  }
  func.func @transform_4(%arg0: i32) -> (i32, i32, i32) {
    %c0_i32 = arith.constant 0 : i32
    %c0_i32_0 = arith.constant 0 : i32
    %c0_i32_1 = arith.constant 0 : i32
    return %arg0, %c0_i32, %c0_i32_0 : i32, i32, i32
  }
}

</mosaic_0001>

<bundles_post_ra>
// kernel: tpu_custom_call.1
= control target key start
LH: loop header
LB: loop body
LE: loop exit
PB: predicated region body
PF: predicated region fallthrough
CT: control target
= control target key end

     0   :  { %9 = vsyncpa [#allocation3], 0  ;;  %s2000_s0 = inlined_call_operand.hbm [shape: f32[2,8,32], index: 0, kind: input, shape index: {}]   ;;  %s2001_s1 = inlined_call_operand.hbm [shape: f32[32,96], index: 1, kind: input, shape index: {}]   ;;  %s2002_s2 = inlined_call_operand.hbm [shape: f32[32,32], index: 2, kind: input, shape index: {}]   ;;  %s2003_s3 = inlined_call_operand.hbm [shape: f32[4,8,8], index: 3, kind: input, shape index: {}]   ;;  %s2004_s4 = inlined_call_operand.hbm [shape: f32[2,8,32], index: 4, kind: output, shape index: {}]  }
   0x1   :  { %11 = vsyncpa [#allocation3 + $0x1], 0 }
   0x2   :  { %12 = vsyncpa [#allocation6], 0 }
   0x3   :  { %13 = vsyncpa [#allocation9], 0 }
   0x4   :  { %14 = vsyncpa [#allocation4], 0 }
   0x5   :  { %16 = vsyncpa [#allocation4 + $0x1], 0  ;;  %s1609_s15 = smov 0   ;;  %s1611_s16 = smov 0  }
   0x6   :  { %s1613_s17 = smov 0   ;;  %s1615_s18 = smov 0  }
   0x7 LB: > { %s153_s21 = sshll.u32 %s2001_s1, 4  ;;  %s1633_s22 = sadd.s32 4294967295, %s1567_s18   ;;  %s1567_s18 = sphi %s1615_s18, %s2015_s18   ;;  %s1563_s17 = sphi %s1613_s17, %s2014_s17   ;;  %s1559_s16 = sphi %s1611_s16, %s2013_s16   ;;  %s1555_s15 = sphi %s1609_s15, %s2012_s15   ;;  %s154_s21 = int_to_ptr.hbm [resolvable:$true] %s153_s21 }
   0x8   : > { %p1227_p0 = scmp.ge.s32.totalorder %s1567_s18, 1  ;;  %p43_p1 = scmp.eq.s32.totalorder %s1633_s22, 0 }
   0x9   : > { %p142_p2 = scmp.lt.s32.totalorder %s1567_s18, 3  ;;  %s1569_s24 = smov [#allocation5]  }
   0xa   : > { %s155_s25 = sshll.u32 %s1569_s24, 4  ;;  %s167_s28 = sshll.u32 %s2002_s2, 4  ;;  %s156_s25 = int_to_ptr.vmem [resolvable:$true] %s155_s25  ;;  %s168_s28 = int_to_ptr.hbm [resolvable:$true] %s167_s28 }
   0xb   : > { %p1638_p3 = pnand %p1227_p0, %p142_p2  ;;  %s181_s6 = sshll.u32 %s2003_s3, 4  ;;  %s182_s6 = int_to_ptr.hbm [resolvable:$true] %s181_s6 }
   0xc   : > { %s1570_s7 = smov [#allocation7]   ;;  %s1571_s9 = smov 128  }
   0xd   : > { %p1274_p4 = pneg %p1638_p3  ;;  %s169_s8 = sshll.u32 %s1570_s7, 4  ;;  %s170_s8 = int_to_ptr.vmem [resolvable:$true] %s169_s8 }
   0xe   : > { %s1572_s10 = smov 8   ;;  %s1573_s11 = smov [#allocation8]  }
   0xf   : > { %p1650_p6 = pnand %p1274_p4, %p43_p1  ;;  %s183_s12 = sshll.u32 %s1573_s11, 4  ;;  %s184_s12 = int_to_ptr.vmem [resolvable:$true] %s183_s12 }
  0x10   : > { %s1226_s13 = sadd.s32 4294967294, %s1567_s18   ;;  %s1665_s14 = sadd.s32 1, %s1567_s18  }
  0x11   : > { %1277 = dma.hbm_to_vmem [thread:$0]  (!%p1650_p6), %s154_s21, 512, %s156_s25, [#allocation6], %s1571_s9, %s1571_s9, %s1572_s10  }
  0x12   : > { %1280 = dma.hbm_to_vmem [thread:$0]  (!%p1650_p6), %s168_s28, 512, %s170_s8, [#allocation6], %s1571_s9, %s1571_s9, %s1572_s10  }
  0x13   : > { %1283 = dma.hbm_to_vmem [thread:$0]  (!%p1650_p6), %s182_s6, 512, %s184_s12, [#allocation9], %s1571_s9, %s1571_s9, %s1572_s10  }
  0x14   : > { %s29_s19 = sadd.s32 1, %s1563_s17  ;;  %s26_s20 = ssub.s32 %s1567_s18, %s1665_s14 }
  0x15   : > { %p36_p7 = scmp.ne.s32.totalorder %s1563_s17, %s1559_s16  ;;  %p27_p8 = scmp.eq.s32.totalorder %s26_s20, 0 }
  0x16   : > { %p37_p9 = scmp.eq.s32.totalorder %s1567_s18, 0  ;;  %p42_p10 = scmp.ne.s32.totalorder %s1559_s16, %s1555_s15 }
  0x17   : > { %p129_p11 = scmp.eq.s32.totalorder %s1633_s22, 1  ;;  %p135_p0 = scmp.eq.s32.totalorder %s1226_s13, 1 }
  0x18   : > { %s1677_s21 = scalar_select %p27_p8, %s1563_s17, %s29_s19  }
  0x19   : > { %p1681_p12 = por %p43_p1, %p42_p10  ;;  %p1685_p13 = por %p129_p11, %p36_p7 }
  0x1a   : > { %p38_p2 = por %p37_p9, %p36_p7  ;;  %s197_s26 = sand.u32 1, %s1563_s17  }
  0x1b   : > { %p1690_p4 = por %p135_p0, %p42_p10  ;;  %p1295_p6 = scmp.lt.s32.totalorder %s1567_s18, 2 }
  0x1c   : > { %s1232_s28 = sshll.u32 %s197_s26, 3  ;;  %s1233_s29 = sshll.u32 %s1567_s18, 3 }
  0x1d   : > { %s205_s6 = scalar_lea.hbm %s2000_s0, %s1233_s29  ;;  %s201_s8 = scalar_lea.vmem [#allocation2], %s1232_s28 }
  0x1e   : > { %s207_s7 = sshll.u32 %s205_s6, 4  ;;  %s209_s9 = sshll.u32 %s201_s8, 4  ;;  %s208_s7 = int_to_ptr.hbm [resolvable:$true] %s207_s7  ;;  %s210_s9 = int_to_ptr.vmem [resolvable:$true] %s209_s9 }
  0x1f   : > { %p1699_p8 = pnand %p1295_p6, %p38_p2  ;;  %s198_s11 = scalar_lea.sflag [#allocation3], %s197_s26 }
  0x20   : > { %s1463_s12 = sshra.s32 %s208_s7, 4  ;;  %s1470_s28 = scalar_lea.hbm %s2000_s0, 16  ;;  %s1464_s12 = int_to_ptr.hbm [resolvable:$true] %s1463_s12 }
  0x21   : > { %s1465_s13 = scalar_lea.hbm %s1464_s12, 8  ;;  %p1467_p9 = pneg %p1699_p8 }
  0x22   : > { %p1466_p7 = scmp.ne.s32.totalorder %s1464_s12, %s1465_s13  ;;  %p1471_p0 = scmp.lt.s32.totalorder %s1464_s12, %s2000_s0 }
  0x23   : > { %p1472_p2 = scmp.lt.s32.totalorder %s1470_s28, %s1465_s13 }
  0x24   : > { %p1468_p10 = pnand %p1467_p9, %p1466_p7 }
  0x25   : > { %p1473_p6 = por %p1472_p2, %p1471_p0 }
  0x26   : > { %p1469_p11 = pneg %p1468_p10 }
  0x28   : > { %p1474_p5 = pnand %p1473_p6, %p1469_p11 }
  0x2a   : > { %1477 = shalt.err (!%p1474_p5)
}
  0x2b   : > { %1287 = dma.hbm_to_vmem [thread:$0]  (!%p1699_p8), %s208_s7, 128, %s210_s9, %s198_s11  }
  0x2c   : > { %218 = sbr.rel (%p1638_p3) target bundleno = 1255 (0x4e7), region = 36  ;;  %s1716_s26 = sand.u32 (!%p1638_p3), 1, %s1559_s16  }
  0x2d   : > { %s1235_s5 = sshll.u32 (!%p1638_p3), %s1716_s26, 3  ;;  %s221_s6 = scalar_lea.sflag (!%p1638_p3), [#allocation3], %s1716_s26 }
  0x2e   : > { %s224_s8 = scalar_lea.vmem (!%p1638_p3), [#allocation2], %s1235_s5 }
  0x31   : > { %1538 = dma.done.wait (%p1681_p12), %s221_s6, 128  }
  0x32   : > { %1540 = vsyncadd (%p1681_p12), %s221_s6, 4294967168 }
  0x33   : > { %1542 = dma.done.wait (%p43_p1), [#allocation6], 1024  }
  0x34   : > { %1544 = vsyncadd (%p43_p1), [#allocation6], 4294966272 }
  0x35   : > { %1546 = dma.done.wait (%p43_p1), [#allocation9], 512  }
  0x36   : > { %1548 = vsyncadd (%p43_p1), [#allocation9], 4294966784  ;;  %v269_v0 = vld [vmem:[#allocation5 + $0x18] sm:$0xff]  ;;  %v268_v1 = vld [vmem:[#allocation5 + $0x10] sm:$0xff]  ;;  %vm270_vm0 = vcmask 261120   ;;  %s1574_s23 = smov 96  }
  0x37   : > { %286 = vmatpush.msra.mxu0 %v269_v0  ;;  %v267_v2 = vld [vmem:[#allocation5 + $0x8] sm:$0xff]  ;;  %v266_v3 = vld [vmem:[#allocation5] sm:$0xff]  ;;  %v265_v4 = vld [vmem:[%s224_s8] sm:$0xff]  ;;  %s1575_s24 = smov 120   ;;  %s1576_s7 = smov 112   ;;  %vm305_vm1 = vcmask 1047556  }
  0x38   : > { %s1577_s9 = smov 104   ;;  %v1578_v9 = vmov 1983009808   ;;  %v1579_v20 = vmov 1934713408   ;;  %vm663_vm2 = vcmask 64512  }
  0x39   : > { %287 = vmatpush.msra.mxu0 %v268_v1  ;;  %v310_v10 = vunpack.c.l.s4 %v1578_v9  ;;  %v334_v21 = vunpack.c.l.s4 %v1579_v20  ;;  %s1580_s10 = smov 64   ;;  %s1581_s11 = smov 16  }
  0x3a   : > { %s1582_s12 = smov 8   ;;  %s1583_s13 = smov 24  }
  0x3b   : > { %288 = vmatpush.msra.mxu0 %v267_v2  ;;  %v1752_v13 = vunpack.c.0.s8 %v310_v10  ;;  %v1768_v27 = vunpack.c.0.s8 %v334_v21  ;;  %s1255_s19 = sshll.u32 %s1633_s22, 3  ;;  %s264_s30 = scalar_lea.vmem [#allocation10], %s1235_s5 }
  0x3c   : > { %s1122_s29 = scalar_lea.hbm %s2004_s4, %s1255_s19  ;;  %s1124_s6 = sshll.u32 %s264_s30, 4  ;;  %s1125_s6 = int_to_ptr.vmem [resolvable:$true] %s1124_s6 }
  0x3d   : > { %289 = vmatpush.msra.mxu0 %v266_v3  ;;  %s1126_s8 = sshll.u32 %s1122_s29, 4  ;;  %s1127_s8 = int_to_ptr.hbm [resolvable:$true] %s1126_s8 }
  0x3e   : > { %1240 = vmatmul.msk.f32.vlgmr.msra.gmra.mxu0 %vm270_vm0, %v265_v4 }
  0xbb   : > { %v1735_v5 = vpop.f32.mrf.mxu0 }
  0xbc   : > { %415 = vrot.lane.b32.xlu2 %v1735_v5, %s1574_s23  ;;  %295 = vrot.lane.b32.xlu1 %v1735_v5, %s1575_s24  ;;  %v307_v12 = vrot.slane %v1735_v5, 4  ;;  %s1507_s24 = sshra.s32 %s1127_s8, 4  ;;  %s1508_s24 = int_to_ptr.hbm [resolvable:$true] %s1507_s24 }
  0xbd   : > { %298 = vrot.lane.b32.xlu0 %v1735_v5, %s1576_s7  ;;  %s1509_s7 = scalar_lea.hbm %s1508_s24, 8  ;;  %p1514_p12 = scmp.lt.s32.totalorder %s1508_s24, %s2004_s4 }
  0xbe   : > { %p1510_p1 = scmp.ne.s32.totalorder %s1508_s24, %s1509_s7 }
  0xc0   : > { %p1511_p3 = pnand %p1510_p1, %p1685_p13 }
  0xc2   : > { %p1512_p5 = pneg %p1511_p3 }
  0xc5   : > { %301 = vrot.lane.b32.xlu0 %v1735_v5, %s1577_s9 }
 0x116   : > { %v416_v31 = vpop.permute.xlu2 %415 }
 0x117   : > { %v429_v46 = vrot.slane %v416_v31, 4 }
 0x12e   : > { %v1741_v6 = vpop.permute.xlu1 %295 }
 0x12f   : > { %v1743_v7 = vpop.permute.xlu0 %298  ;;  %417 = vrot.lane.b32.xlu0 %v1741_v6, %s1574_s23  ;;  %v319_v14 = vrot.slane %v1741_v6, 4 }
 0x130   : > { %419 = vrot.lane.b32.xlu1 %v1743_v7, %s1574_s23  ;;  %v304_v11 = vrot.slane %v1743_v7, 4  ;;  %v308_v15 = vsel %vm305_vm1, %v1743_v7, %v307_v12 }
 0x131   : > { %v316_v19 = vperm.slane %v308_v15, %v1752_v13 }
 0x132   : > { %v306_v17 = vsel %vm305_vm1, %v304_v11, %v1735_v5 }
 0x133   : > { %v312_v23 = vperm.slane %v306_v17, %v1752_v13  ;;  %v343_v25 = vrot.slane %v316_v19, 4 }
 0x135   : > { %v331_v28 = vrot.slane %v312_v23, 4 }
 0x137   : > { %v1747_v8 = vpop.permute.xlu0 %301 }
 0x138   : > { %421 = vrot.lane.b32.xlu2 %v1747_v8, %s1574_s23  ;;  %v317_v16 = vrot.slane %v1747_v8, 4  ;;  %v320_v18 = vsel %vm305_vm1, %v1747_v8, %v319_v14  ;;  %s1112_s23 = scalar_lea.sflag [#allocation4], %s1716_s26 }
 0x139   : > { %v328_v24 = vperm.slane %v320_v18, %v1752_v13 }
 0x13a   : > { %v318_v22 = vsel %vm305_vm1, %v317_v16, %v1741_v6 }
 0x13b   : > { %v324_v26 = vperm.slane %v318_v22, %v1752_v13  ;;  %v341_v29 = vrot.slane %v328_v24, 4  ;;  %v344_v30 = vsel %vm305_vm1, %v328_v24, %v343_v25 }
 0x13c   : > { %v352_v34 = vperm.slane %v344_v30, %v1768_v27 }
 0x13d   : > { %v329_v32 = vrot.slane %v324_v26, 4  ;;  %v332_v33 = vsel %vm305_vm1, %v324_v26, %v331_v28  ;;  %v342_v35 = vsel %vm305_vm1, %v341_v29, %v316_v19 }
 0x13e   : > { %v340_v36 = vperm.slane %v332_v33, %v1768_v27  ;;  %v348_v38 = vperm.slane %v342_v35, %v1768_v27  ;;  %v359_v39 = vrot.slane %v352_v34, 4 }
 0x13f   : > { %v330_v37 = vsel %vm305_vm1, %v329_v32, %v312_v23 }
 0x140   : > { %v336_v40 = vperm.slane %v330_v37, %v1768_v27  ;;  %v355_v41 = vrot.slane %v340_v36, 4  ;;  %v357_v43 = vrot.slane %v348_v38, 4  ;;  %v360_v44 = vsel %vm305_vm1, 0.0, %v359_v39 }
 0x141   : > { %v377_v50 = vrot.slane %v360_v44, 4  ;;  %v372_v54 = vsel %vm305_vm1, %v359_v39, %v348_v38 }
 0x142   : > { %v353_v48 = vrot.slane %v336_v40, 4  ;;  %v356_v49 = vsel %vm305_vm1, 0.0, %v355_v41  ;;  %v358_v58 = vsel %vm305_vm1, 0.0, %v357_v43  ;;  %v361_v61 = vsel %vm305_vm1, %v355_v41, %v336_v40 }
 0x143   : > { %v366_v62 = vrot.slane %v356_v49, 4  ;;  %v365_v10 = vperm.slane %v361_v61, %v1752_v13  ;;  %v376_v11 = vperm.slane %v372_v54, %v1752_v13  ;;  %v378_v12 = vsel %vm305_vm1, %v377_v50, %v358_v58 }
 0x144   : > { %v354_v2 = vsel %vm305_vm1, 0.0, %v353_v48  ;;  %v382_v23 = vperm.slane %v378_v12, %v1752_v13 }
 0x145   : > { %v367_v17 = vsel %vm305_vm1, %v366_v62, %v354_v2  ;;  %v397_v28 = vrot.slane %v376_v11, 4  ;;  %v385_v30 = vrot.slane %v365_v10, 4 }
 0x146   : > { %v371_v26 = vperm.slane %v367_v17, %v1752_v13  ;;  %v395_v38 = vrot.slane %v382_v23, 4 }
 0x147   : > { %v398_v41 = vsel %vm305_vm1, %v382_v23, %v397_v28 }
 0x192   : > { %v422_v42 = vpop.permute.xlu2 %421 }
 0x193   : > { %v439_v45 = vrot.slane %v422_v42, 4 }
 0x1a1   : > { %v418_v47 = vpop.permute.xlu0 %417 }
 0x1a2   : > { %v420_v51 = vpop.permute.xlu1 %419  ;;  %v440_v52 = vsel %vm305_vm1, %v439_v45, %v418_v47  ;;  %v441_v53 = vrot.slane %v418_v47, 4 }
 0x1a3   : > { %v427_v55 = vrot.slane %v420_v51, 4  ;;  %v430_v56 = vsel %vm305_vm1, %v420_v51, %v429_v46  ;;  %v446_v57 = vperm.slane %v440_v52, %v1752_v13  ;;  %v396_v51 = vsel %vm305_vm1, %v395_v38, %v376_v11 }
 0x1a4   : > { %v438_v59 = vperm.slane %v430_v56, %v1752_v13  ;;  %v442_v60 = vsel %vm305_vm1, %v422_v42, %v441_v53  ;;  %v383_v42 = vrot.slane %v371_v26, 4  ;;  %v402_v62 = vperm.slane %v396_v51, %v1768_v27 }
 0x1a5   : > { %v428_v63 = vsel %vm305_vm1, %v427_v55, %v416_v31  ;;  %v450_v0 = vperm.slane %v442_v60, %v1752_v13  ;;  %v451_v1 = vrot.slane %v446_v57, 4  ;;  %v406_v55 = vperm.slane %v398_v41, %v1768_v27 }
 0x1a6   : > { %v434_v3 = vperm.slane %v428_v63, %v1752_v13  ;;  %v465_v4 = vrot.slane %v438_v59, 4  ;;  %v384_v58 = vsel %vm305_vm1, %v383_v42, %v365_v10 }
 0x1a7   : > { %v463_v9 = vrot.slane %v450_v0, 4 }
 0x1a8   : > { %v453_v14 = vrot.slane %v434_v3, 4  ;;  %v452_v15 = vsel %vm305_vm1, %v451_v1, %v434_v3  ;;  %v466_v16 = vsel %vm305_vm1, %v450_v0, %v465_v4  ;;  %v411_v4 = vrot.slane %v406_v55, 4 }
 0x1a9   : > { %v458_v18 = vperm.slane %v452_v15, %v1768_v27  ;;  %v464_v19 = vsel %vm305_vm1, %v463_v9, %v438_v59  ;;  %v474_v20 = vperm.slane %v466_v16, %v1768_v27  ;;  %v390_v9 = vperm.slane %v384_v58, %v1768_v27 }
 0x1aa   : > { %v454_v21 = vsel %vm305_vm1, %v446_v57, %v453_v14  ;;  %v470_v22 = vperm.slane %v464_v19, %v1768_v27  ;;  %v386_v57 = vsel %vm305_vm1, %v371_v26, %v385_v30  ;;  %v407_v15 = vrot.slane %v402_v62, 4  ;;  %v659_v26 = vld [vmem:[#allocation8] sm:$0xff]  ;;  %v661_v30 = vld [vmem:[#allocation8 + $0x10] sm:$0xff] }
 0x1ab   : > { %v462_v24 = vperm.slane %v454_v21, %v1768_v27  ;;  %v481_v25 = vrot.slane %v474_v20, 4  ;;  %v475_v31 = vrot.slane %v458_v18, 4  ;;  %v394_v3 = vperm.slane %v386_v57, %v1768_v27 }
 0x1ac   : > { %v479_v29 = vrot.slane %v470_v22, 4  ;;  %v409_v20 = vrot.slane %v390_v9, 4 }
 0x1ad   : > { %v477_v32 = vrot.slane %v462_v24, 4  ;;  %v482_v33 = vsel %vm305_vm1, 0.0, %v481_v25  ;;  %v494_v34 = vsel %vm305_vm1, %v481_v25, %v470_v22  ;;  %v476_v47 = vsel %vm305_vm1, 0.0, %v475_v31 }
 0x1ae   : > { %v499_v35 = vrot.slane %v482_v33, 4  ;;  %v480_v36 = vsel %vm305_vm1, 0.0, %v479_v29  ;;  %v498_v37 = vperm.slane %v494_v34, %v1752_v13  ;;  %v412_v19 = vsel %vm305_vm1, %v411_v4, %v394_v3  ;;  %v660_v34 = vld [vmem:[#allocation8 + $0x8] sm:$0xff] }
 0x1af   : > { %v478_v39 = vsel %vm305_vm1, 0.0, %v477_v32  ;;  %v483_v40 = vsel %vm305_vm1, %v477_v32, %v458_v18  ;;  %v408_v22 = vsel %vm305_vm1, %v407_v15, %v390_v9  ;;  %v410_v23 = vsel %vm305_vm1, %v402_v62, %v409_v20 }
 0x1b0   : > { %v488_v43 = vrot.slane %v478_v39, 4  ;;  %v487_v44 = vperm.slane %v483_v40, %v1752_v13  ;;  %v500_v45 = vsel %vm305_vm1, %v499_v35, %v480_v36  ;;  %v519_v46 = vrot.slane %v498_v37, 4  ;;  %v662_v39 = vld [vmem:[#allocation8 + $0x18] sm:$0xff] }
 0x1b1   : > { %v504_v48 = vperm.slane %v500_v45, %v1752_v13  ;;  %v413_v24 = vrot.slane %v394_v3, 4 }
 0x1b2   : > { %v489_v49 = vsel %vm305_vm1, %v488_v43, %v476_v47  ;;  %v507_v50 = vrot.slane %v487_v44, 4  ;;  %v1347_v43 = vpack.i.bf16 %v1741_v6, %v1735_v5 }
 0x1b3   : > { %v493_v52 = vperm.slane %v489_v49, %v1752_v13  ;;  %v520_v53 = vsel %vm305_vm1, %v504_v48, %v519_v46  ;;  %v517_v54 = vrot.slane %v504_v48, 4  ;;  %v414_v25 = vsel %vm305_vm1, %v406_v55, %v413_v24 }
 0x1b4   : > { %v528_v56 = vperm.slane %v520_v53, %v1768_v27 }
 0x1b5   : > { %v508_v59 = vsel %vm305_vm1, %v493_v52, %v507_v50  ;;  %v505_v60 = vrot.slane %v493_v52, 4  ;;  %v518_v61 = vsel %vm305_vm1, %v517_v54, %v498_v37 }
 0x1b6   : > { %v516_v63 = vperm.slane %v508_v59, %v1768_v27  ;;  %v533_v0 = vrot.slane %v528_v56, 4  ;;  %v524_v1 = vperm.slane %v518_v61, %v1768_v27 }
 0x1b7   : > { %v506_v2 = vsel %vm305_vm1, %v505_v60, %v487_v44  ;;  %v1352_v44 = vpack.i.bf16 %v1747_v8, %v1743_v7 }
 0x1b8   : > { %v534_v10 = vsel %vm305_vm1, %v533_v0, %v516_v63  ;;  %v512_v11 = vperm.slane %v506_v2, %v1768_v27  ;;  %v529_v12 = vrot.slane %v524_v1, 4  ;;  %v535_v14 = vrot.slane %v516_v63, 4 }
 0x1b9   : > { %1245 = vmatpush.xpose.msk.msra.mxu3 %vm663_vm2, %v534_v10 }
 0x1ba   : > { %v530_v16 = vsel %vm305_vm1, %v529_v12, %v512_v11  ;;  %v536_v17 = vsel %vm305_vm1, %v528_v56, %v535_v14  ;;  %v531_v18 = vrot.slane %v512_v11, 4 }
 0x1bb   : > { %1241 = vmatpush.xpose.msk.msra.mxu1 %vm663_vm2, %v530_v16 }
 0x1bc   : > { %1246 = vmatmul.msk.f32.vlgmr.msra.gmra.mxu3 %vm663_vm2, %v412_v19  ;;  %v532_v21 = vsel %vm305_vm1, %v524_v1, %v531_v18 }
 0x1bd   : > { %1243 = vmatpush.xpose.msk.msra.mxu2 %vm663_vm2, %v532_v21 }
 0x1be   : > { %1242 = vmatmul.msk.f32.vlgmr.msra.gmra.mxu1 %vm663_vm2, %v408_v22 }
 0x1bf   : > { %1247 = vmatpush.xpose.msk.msrb.mxu1 %vm663_vm2, %v536_v17 }
 0x1c0   : > { %1244 = vmatmul.msk.f32.vlgmr.msra.gmra.mxu2 %vm663_vm2, %v410_v23 }
 0x1c6   : > { %1248 = vmatmul.msk.f32.vlgmr.msrb.gmra.mxu1 %vm663_vm2, %v414_v25 }
 0x23b   : > { %v687_v28 = vpop.f32.mrf.mxu1 }
 0x23c   : > { %v688_v29 = vadd.f32 %v687_v28, %v659_v26 }
 0x23e   : > { %v768_v31 = vsel %vm663_vm2, %v688_v29, -inf }
 0x23f   : > { %v739_v32 = vpop.f32.mrf.mxu3  ;;  %769 = vmax.xlane.f32.xlu1 %v768_v31 }
 0x240   : > { %v740_v33 = vadd.f32 %v739_v32, %v661_v30 }
 0x242   : > { %v774_v35 = vsel %vm663_vm2, %v740_v33, -inf }
 0x243   : > { %775 = vmax.xlane.f32.xlu0 %v774_v35  ;;  %v713_v36 = vpop.f32.mrf.mxu2  ;;  %v765_v40 = vpop.f32.mrf.mxu1 }
 0x244   : > { %v714_v37 = vadd.f32 %v713_v36, %v660_v34  ;;  %v766_v41 = vadd.f32 %v765_v40, %v662_v39 }
 0x246   : > { %v771_v38 = vsel %vm663_vm2, %v714_v37, -inf  ;;  %v777_v42 = vsel %vm663_vm2, %v766_v41, -inf }
 0x247   : > { %772 = vmax.xlane.f32.xlu2 %v771_v38 }
 0x24f   : > { %778 = vmax.xlane.f32.xlu2 %v777_v42 }
 0x258   : > { %1348 = vrot.lane.b32.xlu1 %v1347_v43, %s1580_s10 }
 0x267   : > { %1353 = vrot.lane.b32.xlu2 %v1352_v44, %s1580_s10  ;;  %s1513_s10 = scalar_lea.hbm %s2004_s4, 16 }
 0x268   : > { %p1515_p8 = scmp.lt.s32.totalorder %s1513_s10, %s1509_s7 }
 0x26a   : > { %p1516_p7 = por %p1515_p8, %p1514_p12 }
 0x26c   : > { %p1517_p9 = pnand %p1516_p7, %p1512_p5 }
 0x2b2   : > { %v770_v45 = vpop.xlane.xlu1 %769 }
 0x2b3   : > { %v780_v46 = vsub.f32 %v688_v29, %v770_v45 }
 0x2b5   : > { %v784_v47 = vmul.f32 1.442695, %v780_v46 }
 0x2b6   : > { %v776_v48 = vpop.xlane.xlu0 %775 }
 0x2b7   : > { %1357 = vpow2.f32 %v784_v47  ;;  %v782_v52 = vsub.f32 %v740_v33, %v776_v48 }
 0x2b9   : > { %v788_v6 = vmul.f32 1.442695, %v782_v52 }
 0x2ba   : > { %v773_v49 = vpop.xlane.xlu2 %772 }
 0x2bb   : > { %v781_v50 = vsub.f32 %v714_v37, %v773_v49 }
 0x2bd   : > { %v1858_v51 = vpop.eup %1357  ;;  %v786_v53 = vmul.f32 1.442695, %v781_v50 }
 0x2be   : > { %v792_v5 = vsel %vm663_vm2, %v1858_v51, 0.0 }
 0x2bf   : > { %1359 = vpow2.f32 %v786_v53  ;;  %793 = vadd.xlane.f32.xlu0 %v792_v5 }
 0x2c0   : > { %1361 = vpow2.f32 %v788_v6 }
 0x2c2   : > { %v779_v54 = vpop.xlane.xlu2 %778 }
 0x2c3   : > { %v783_v7 = vsub.f32 %v766_v41, %v779_v54 }
 0x2c5   : > { %v1862_v8 = vpop.eup %1359  ;;  %v790_v55 = vmul.f32 1.442695, %v783_v7 }
 0x2c6   : > { %v795_v56 = vsel %vm663_vm2, %v1862_v8, 0.0  ;;  %v1866_v59 = vpop.eup %1361 }
 0x2c7   : > { %1363 = vpow2.f32 %v790_v55  ;;  %796 = vadd.xlane.f32.xlu0 %v795_v56  ;;  %v798_v10 = vsel %vm663_vm2, %v1866_v59, 0.0 }
 0x2ca   : > { %v1354_v57 = vpop.permute.xlu2 %1353  ;;  %v1349_v58 = vpop.permute.xlu1 %1348 }
 0x2cb   : > { %v1356_v60 = vunpack.i.h.bf16 %v1354_v57  ;;  %v1355_v61 = vunpack.i.l.bf16 %v1354_v57  ;;  %v1351_v62 = vunpack.i.h.bf16 %v1349_v58  ;;  %v1350_v63 = vunpack.i.l.bf16 %v1349_v58 }
 0x2cd   : > { %v1868_v0 = vpop.eup %1363  ;;  %v561_v1 = vrot.slane %v1356_v60, 4  ;;  %v549_v2 = vrot.slane %v1355_v61, 4  ;;  %v563_v3 = vrot.slane %v1351_v62, 4  ;;  %v551_v4 = vrot.slane %v1350_v63, 4 }
 0x2ce   : > { %v801_v9 = vsel %vm663_vm2, %v1868_v0, 0.0 }
 0x2cf   : > { %v562_v11 = vsel %vm305_vm1, %v561_v1, %v1351_v62  ;;  %v564_v12 = vsel %vm305_vm1, %v1356_v60, %v563_v3  ;;  %v550_v14 = vsel %vm305_vm1, %v549_v2, %v1350_v63  ;;  %v552_v15 = vsel %vm305_vm1, %v1355_v61, %v551_v4  ;;  %802 = vadd.xlane.f32.xlu1 %v801_v9 }
 0x2d0   : > { %v568_v16 = vperm.slane %v562_v11, %v1752_v13  ;;  %v572_v17 = vperm.slane %v564_v12, %v1752_v13  ;;  %v556_v18 = vperm.slane %v550_v14, %v1752_v13  ;;  %v560_v19 = vperm.slane %v552_v15, %v1752_v13  ;;  %799 = vadd.xlane.f32.xlu0 %v798_v10 }
 0x2d2   : > { %v573_v20 = vrot.slane %v568_v16, 4  ;;  %v585_v21 = vrot.slane %v572_v17, 4  ;;  %v575_v22 = vrot.slane %v556_v18, 4  ;;  %v587_v23 = vrot.slane %v560_v19, 4 }
 0x2d4   : > { %v574_v24 = vsel %vm305_vm1, %v573_v20, %v556_v18  ;;  %v576_v25 = vsel %vm305_vm1, %v568_v16, %v575_v22  ;;  %v586_v26 = vsel %vm305_vm1, %v585_v21, %v560_v19  ;;  %v588_v28 = vsel %vm305_vm1, %v572_v17, %v587_v23 }
 0x2d5   : > { %v580_v29 = vperm.slane %v574_v24, %v1768_v27  ;;  %v584_v30 = vperm.slane %v576_v25, %v1768_v27  ;;  %v592_v31 = vperm.slane %v586_v26, %v1768_v27  ;;  %v596_v32 = vperm.slane %v588_v28, %v1768_v27 }
 0x2d7   : > { %v597_v33 = vrot.slane %v580_v29, 4  ;;  %v599_v34 = vrot.slane %v584_v30, 4  ;;  %v601_v35 = vrot.slane %v592_v31, 4  ;;  %v603_v36 = vrot.slane %v596_v32, 4 }
 0x2d9   : > { %v600_v37 = vsel %vm305_vm1, 0.0, %v599_v34  ;;  %v604_v38 = vsel %vm305_vm1, 0.0, %v603_v36  ;;  %v605_v41 = vsel %vm305_vm1, %v599_v34, %v580_v29  ;;  %v616_v42 = vsel %vm305_vm1, %v603_v36, %v592_v31 }
 0x2da   : > { %v610_v39 = vrot.slane %v600_v37, 4  ;;  %v621_v40 = vrot.slane %v604_v38, 4  ;;  %v598_v43 = vsel %vm305_vm1, 0.0, %v597_v33  ;;  %v602_v44 = vsel %vm305_vm1, 0.0, %v601_v35 }
 0x2db   : > { %v609_v45 = vperm.slane %v605_v41, %v1752_v13  ;;  %v620_v46 = vperm.slane %v616_v42, %v1752_v13 }
 0x2dc   : > { %v611_v47 = vsel %vm305_vm1, %v610_v39, %v598_v43  ;;  %v622_v48 = vsel %vm305_vm1, %v621_v40, %v602_v44 }
 0x2dd   : > { %v615_v49 = vperm.slane %v611_v47, %v1752_v13  ;;  %v626_v50 = vperm.slane %v622_v48, %v1752_v13  ;;  %v629_v52 = vrot.slane %v609_v45, 4  ;;  %v641_v53 = vrot.slane %v620_v46, 4 }
 0x2df   : > { %v630_v5 = vsel %vm305_vm1, %v615_v49, %v629_v52  ;;  %v642_v6 = vsel %vm305_vm1, %v626_v50, %v641_v53  ;;  %v627_v54 = vrot.slane %v615_v49, 4  ;;  %v639_v7 = vrot.slane %v626_v50, 4 }
 0x2e0   : > { %v638_v55 = vperm.slane %v630_v5, %v1768_v27  ;;  %v650_v56 = vperm.slane %v642_v6, %v1768_v27 }
 0x2e1   : > { %v628_v57 = vsel %vm305_vm1, %v627_v54, %v609_v45  ;;  %v640_v58 = vsel %vm305_vm1, %v639_v7, %v620_v46 }
 0x2e2   : > { %v655_v60 = vrot.slane %v650_v56, 4  ;;  %v657_v61 = vrot.slane %v638_v55, 4  ;;  %v634_v62 = vperm.slane %v628_v57, %v1768_v27  ;;  %v646_v63 = vperm.slane %v640_v58, %v1768_v27 }
 0x2e4   : > { %v656_v1 = vsel %vm305_vm1, %v655_v60, %v638_v55  ;;  %v658_v2 = vsel %vm305_vm1, %v650_v56, %v657_v61  ;;  %v651_v3 = vrot.slane %v646_v63, 4  ;;  %v653_v4 = vrot.slane %v634_v62, 4 }
 0x2e5   : > { %928 = vmatpush.msrb.mxu0 %v656_v1  ;;  %951 = vmatpush.msra.mxu1 %v658_v2 }
 0x2e6   : > { %v652_v9 = vsel %vm305_vm1, %v651_v3, %v634_v62  ;;  %v654_v10 = vsel %vm305_vm1, %v646_v63, %v653_v4 }
 0x2e7   : > { %882 = vmatpush.msrb.mxu2 %v652_v9  ;;  %905 = vmatpush.msrb.mxu3 %v654_v10 }
 0x332   : > { %v794_v11 = vpop.xlane.xlu0 %793 }
 0x333   : > { %1365 = vrcp.f32 %v794_v11  ;;  %v815_v18 = vand.u32 2147483648, %v794_v11  ;;  %vm809_vm4 = vweird.f32 %v794_v11  ;;  %v813_v20 = vand.u32 2147483647, %v794_v11 }
 0x335   : > { %v816_v25 = vor.u32 1.1754944e-38, %v815_v18  ;;  %vm814_vm6 = vcmp.eq.f32.partialorder %v813_v20, 8.507059e+37 }
 0x339   : > { %v1366_v12 = vpop.eup %1365 }
 0x33a   : > { %v805_v14 = vmul.f32 %v1366_v12, %v794_v11  ;;  %v797_v15 = vpop.xlane.xlu0 %796  ;;  %vm810_vm3 = vweird.f32 %v1366_v12 }
 0x33b   : > { %1367 = vrcp.f32 %v797_v15  ;;  %vm811_vm5 = vmor %vm809_vm4, %vm810_vm3  ;;  %v830_v29 = vand.u32 2147483648, %v797_v15  ;;  %v828_v32 = vand.u32 2147483647, %v797_v15  ;;  %vm824_vm8 = vweird.f32 %v797_v15 }
 0x33c   : > { %v806_v16 = vsub.f32 1.0, %v805_v14 }
 0x33d   : > { %v831_v36 = vor.u32 1.1754944e-38, %v830_v29  ;;  %vm829_vm10 = vcmp.eq.f32.partialorder %v828_v32, 8.507059e+37 }
 0x33e   : > { %v807_v17 = vmul.f32 %v1366_v12, %v806_v16 }
 0x340   : > { %v808_v19 = vadd.f32 %v1366_v12, %v807_v17 }
 0x341   : > { %v1368_v21 = vpop.eup %1367 }
 0x342   : > { %v820_v22 = vmul.f32 %v1368_v21, %v797_v15  ;;  %v803_v23 = vpop.xlane.xlu1 %802  ;;  %v812_v24 = vsel %vm811_vm5, %v1366_v12, %v808_v19  ;;  %vm825_vm7 = vweird.f32 %v1368_v21 }
 0x343   : > { %v800_v26 = vpop.xlane.xlu0 %799  ;;  %1369 = vrcp.f32 %v803_v23  ;;  %v817_v30 = vsel %vm814_vm6, %v816_v25, %v812_v24  ;;  %vm826_vm9 = vmor %vm824_vm8, %vm825_vm7  ;;  %v860_v45 = vand.u32 2147483648, %v803_v23  ;;  %v858_v47 = vand.u32 2147483647, %v803_v23 }
 0x344   : > { %v821_v28 = vsub.f32 1.0, %v820_v22  ;;  %1371 = vrcp.f32 %v800_v26  ;;  %v818_v33 = vmul.f32 %v1858_v51, %v817_v30  ;;  %v845_v46 = vand.u32 2147483648, %v800_v26 }
 0x345   : > { %v843_v49 = vand.u32 2147483647, %v800_v26  ;;  %vm854_vm13 = vweird.f32 %v803_v23  ;;  %vm839_vm14 = vweird.f32 %v800_v26  ;;  %v861_v53 = vor.u32 1.1754944e-38, %v860_v45 }
 0x346   : > { %v822_v31 = vmul.f32 %v1368_v21, %v821_v28  ;;  %1249 = vmatmul.msk.f32.vlgmr.msrb.gmra.mxu2 %vm663_vm2, %v818_v33  ;;  %v846_v5 = vor.u32 1.1754944e-38, %v845_v46  ;;  %vm859_vm4 = vcmp.eq.f32.partialorder %v858_v47, 8.507059e+37  ;;  %vm1079_vm6 = vcmask 130048  }
 0x347   : > { %vm844_vm5 = vcmp.eq.f32.partialorder %v843_v49, 8.507059e+37  ;;  %vm1081_vm7 = vcmask 195584  }
 0x348   : > { %v823_v34 = vadd.f32 %v1368_v21, %v822_v31 }
 0x349   : > { %v1370_v35 = vpop.eup %1369 }
 0x34a   : > { %v1372_v37 = vpop.eup %1371  ;;  %v850_v38 = vmul.f32 %v1370_v35, %v803_v23  ;;  %v827_v39 = vsel %vm826_vm9, %v1368_v21, %v823_v34  ;;  %vm855_vm11 = vweird.f32 %v1370_v35 }
 0x34b   : > { %v835_v40 = vmul.f32 %v1372_v37, %v800_v26  ;;  %v832_v41 = vsel %vm829_vm10, %v831_v36, %v827_v39  ;;  %vm840_vm12 = vweird.f32 %v1372_v37  ;;  %vm856_vm15 = vmor %vm854_vm13, %vm855_vm11 }
 0x34c   : > { %v851_v42 = vsub.f32 1.0, %v850_v38  ;;  %v833_v43 = vmul.f32 %v1862_v8, %v832_v41  ;;  %vm841_vm3 = vmor %vm839_vm14, %vm840_vm12 }
 0x34d   : > { %v836_v44 = vsub.f32 1.0, %v835_v40 }
 0x34e   : > { %v852_v51 = vmul.f32 %v1370_v35, %v851_v42  ;;  %1250 = vmatmul.msk.f32.vlgmr.msrb.gmra.mxu3 %vm663_vm2, %v833_v43 }
 0x34f   : > { %v837_v48 = vmul.f32 %v1372_v37, %v836_v44 }
 0x350   : > { %v853_v50 = vadd.f32 %v1370_v35, %v852_v51 }
 0x351   : > { %v838_v52 = vadd.f32 %v1372_v37, %v837_v48 }
 0x352   : > { %v857_v8 = vsel %vm856_vm15, %v1370_v35, %v853_v50 }
 0x353   : > { %v862_v6 = vsel %vm859_vm4, %v861_v53, %v857_v8  ;;  %v842_v54 = vsel %vm841_vm3, %v1372_v37, %v838_v52 }
 0x354   : > { %v863_v7 = vmul.f32 %v1868_v0, %v862_v6  ;;  %v847_v55 = vsel %vm844_vm5, %v846_v5, %v842_v54 }
 0x355   : > { %v848_v56 = vmul.f32 %v1866_v59, %v847_v55 }
 0x356   : > { %1252 = vmatmul.msk.f32.vlgmr.msra.gmra.mxu1 %vm663_vm2, %v863_v7 }
 0x357   : > { %1251 = vmatmul.msk.f32.vlgmr.msrb.gmra.mxu0 %vm663_vm2, %v848_v56 }
 0x3c9   : > { %v884_v57 = vpop.f32.mrf.mxu2 }
 0x3ca   : > { %v958_v61 = vrot.slane %v884_v57, 4 }
 0x3d1   : > { %v907_v58 = vpop.f32.mrf.mxu3 }
 0x3d2   : > { %v970_v60 = vrot.slane %v907_v58, 4 }
 0x3d3   : > { %v953_v62 = vpop.f32.mrf.mxu1 }
 0x3d4   : > { %v930_v63 = vpop.f32.mrf.mxu0  ;;  %v968_v1 = vrot.slane %v953_v62, 4  ;;  %v971_v2 = vsel %vm305_vm1, %v953_v62, %v970_v60  ;;  %v1085_v62 = vld [vmem:[#allocation7 + $0x10] sm:$0xff] }
 0x3d5   : > { %v956_v3 = vrot.slane %v930_v63, 4  ;;  %v959_v4 = vsel %vm305_vm1, %v930_v63, %v958_v61  ;;  %v979_v0 = vperm.slane %v971_v2, %v1752_v13  ;;  %v1086_v61 = vld [vmem:[#allocation7 + $0x18] sm:$0xff]  ;;  %v1083_v63 = vld [vmem:[#allocation7] sm:$0xff] }
 0x3d6   : > { %v967_v59 = vperm.slane %v959_v4, %v1752_v13  ;;  %v969_v9 = vsel %vm305_vm1, %v968_v1, %v907_v58  ;;  %1102 = vmatpush.msra.mxu2 %v1086_v61 }
 0x3d7   : > { %v957_v10 = vsel %vm305_vm1, %v956_v3, %v884_v57  ;;  %v975_v11 = vperm.slane %v969_v9, %v1752_v13  ;;  %v992_v12 = vrot.slane %v979_v0, 4 }
 0x3d8   : > { %v963_v14 = vperm.slane %v957_v10, %v1752_v13  ;;  %v994_v15 = vrot.slane %v967_v59, 4  ;;  %1103 = vmatpush.msra.mxu2 %v1085_v62 }
 0x3d9   : > { %v980_v16 = vrot.slane %v975_v11, 4  ;;  %v993_v17 = vsel %vm305_vm1, %v992_v12, %v967_v59 }
 0x3da   : > { %v982_v18 = vrot.slane %v963_v14, 4  ;;  %v995_v19 = vsel %vm305_vm1, %v979_v0, %v994_v15  ;;  %v999_v20 = vperm.slane %v993_v17, %v1768_v27 }
 0x3db   : > { %v981_v21 = vsel %vm305_vm1, %v980_v16, %v963_v14  ;;  %v1003_v22 = vperm.slane %v995_v19, %v1768_v27 }
 0x3dc   : > { %v983_v23 = vsel %vm305_vm1, %v975_v11, %v982_v18  ;;  %v987_v24 = vperm.slane %v981_v21, %v1768_v27  ;;  %v1008_v26 = vrot.slane %v999_v20, 4 }
 0x3dd   : > { %v991_v25 = vperm.slane %v983_v23, %v1768_v27  ;;  %v1010_v28 = vrot.slane %v1003_v22, 4 }
 0x3de   : > { %v1004_v29 = vrot.slane %v987_v24, 4  ;;  %v1009_v36 = vsel %vm305_vm1, 0.0, %v1008_v26 }
 0x3df   : > { %v1006_v30 = vrot.slane %v991_v25, 4  ;;  %v1011_v31 = vsel %vm305_vm1, 0.0, %v1010_v28  ;;  %v1023_v32 = vsel %vm305_vm1, %v1010_v28, %v999_v20 }
 0x3e0   : > { %v1027_v33 = vperm.slane %v1023_v32, %v1752_v13  ;;  %v1028_v34 = vrot.slane %v1011_v31, 4  ;;  %v1005_v42 = vsel %vm305_vm1, 0.0, %v1004_v29 }
 0x3e1   : > { %v1007_v35 = vsel %vm305_vm1, 0.0, %v1006_v30  ;;  %v1012_v37 = vsel %vm305_vm1, %v1006_v30, %v987_v24 }
 0x3e2   : > { %v1017_v38 = vrot.slane %v1007_v35, 4  ;;  %v1016_v39 = vperm.slane %v1012_v37, %v1752_v13  ;;  %v1029_v40 = vsel %vm305_vm1, %v1028_v34, %v1009_v36  ;;  %v1048_v41 = vrot.slane %v1027_v33, 4 }
 0x3e3   : > { %v1033_v43 = vperm.slane %v1029_v40, %v1752_v13 }
 0x3e4   : > { %v1018_v44 = vsel %vm305_vm1, %v1017_v38, %v1005_v42  ;;  %v1036_v45 = vrot.slane %v1016_v39, 4 }
 0x3e5   : > { %v1022_v46 = vperm.slane %v1018_v44, %v1752_v13  ;;  %v1049_v51 = vsel %vm305_vm1, %v1033_v43, %v1048_v41  ;;  %v1046_v47 = vrot.slane %v1033_v43, 4 }
 0x3e6   : > { %v1057_v48 = vperm.slane %v1049_v51, %v1768_v27 }
 0x3e7   : > { %v1037_v49 = vsel %vm305_vm1, %v1022_v46, %v1036_v45  ;;  %v1034_v50 = vrot.slane %v1022_v46, 4  ;;  %v1047_v52 = vsel %vm305_vm1, %v1046_v47, %v1027_v33 }
 0x3e8   : > { %v1045_v53 = vperm.slane %v1037_v49, %v1768_v27  ;;  %v1062_v5 = vrot.slane %v1057_v48, 4  ;;  %v1053_v8 = vperm.slane %v1047_v52, %v1768_v27 }
 0x3e9   : > { %v1035_v6 = vsel %vm305_vm1, %v1034_v50, %v1016_v39 }
 0x3ea   : > { %v1063_v54 = vsel %vm305_vm1, %v1062_v5, %v1045_v53  ;;  %v1041_v13 = vperm.slane %v1035_v6, %v1768_v27  ;;  %v1058_v7 = vrot.slane %v1053_v8, 4  ;;  %v1064_v58 = vrot.slane %v1045_v53, 4  ;;  %v1084_v27 = vld [vmem:[#allocation7 + $0x8] sm:$0xff] }
 0x3eb   : > { %1071 = vrot.lane.b32.xlu0 %v1063_v54, %s1581_s11  ;;  %1104 = vmatpush.msra.mxu2 %v1084_v27 }
 0x3ec   : > { %v1060_v55 = vrot.slane %v1041_v13, 4  ;;  %v1059_v56 = vsel %vm305_vm1, %v1058_v7, %v1041_v13  ;;  %v1065_v60 = vsel %vm305_vm1, %v1057_v48, %v1064_v58 }
 0x3ed   : > { %1105 = vmatpush.msra.mxu2 %v1083_v63 }
 0x3ee   : > { %v1061_v57 = vsel %vm305_vm1, %v1053_v8, %v1060_v55 }
 0x3ef   : > { %1067 = vrot.lane.b32.xlu2 %v1061_v57, %s1582_s12 }
 0x3f7   : > { %1075 = vrot.lane.b32.xlu2 %v1065_v60, %s1583_s13 }
 0x449   : > { %v1068_v1 = vpop.permute.xlu2 %1067 }
 0x44a   : > { %v1078_v2 = vsel %vm663_vm2, %v1059_v56, %v1068_v1 }
 0x451   : > { %v1076_v4 = vpop.permute.xlu2 %1075 }
 0x45d   : > { %v1072_v3 = vpop.permute.xlu0 %1071 }
 0x45e   : > { %v1080_v0 = vsel %vm1079_vm6, %v1078_v2, %v1072_v3 }
 0x45f   : > { %v1082_v59 = vsel %vm1081_vm7, %v1080_v0, %v1076_v4 }
 0x460   : > { %1253 = vmatmul.msk.f32.vlgmr.msra.gmra.mxu2 %vm270_vm0, %v1082_v59 }
 0x4e3   : > { %v1107_v9 = vpop.f32.mrf.mxu2 }
 0x4e4   : > { %1110 = vst.msk [vmem:[%s264_s30] sm:$0xff] %vm270_vm0, %v1107_v9 }
 0x4e5   : > { %1520 = shalt.err (!%p1517_p9)
}
 0x4e6   : > { %1272 = dma.vmem_to_hbm [thread:$0]  (%p1685_p13), %s1125_s6, 128, %s1127_s8, %s1112_s23  }
 0x4e7 PF: > { %s1138_s26 = sand.u32 1, %s1555_s15   ;;  %p2011_p10 = scmp.ge.s32.totalorder %s1567_s18, 2 }
 0x4e8   : > { %s1139_s12 = scalar_lea.sflag [#allocation4], %s1138_s26 }
 0x4e9   : > { %p1289_p11 = pnand %p2011_p10, %p1690_p4 }
 0x4eb   : > { %p1290_p0 = pneg %p1289_p11 }
 0x4ed   : > { %1550 = dma.done.wait (%p1290_p0), %s1139_s12, 128  }
 0x4ee   : > { %1552 = vsyncadd (%p1290_p0), %s1139_s12, 4294967168  ;;  %p19_p2 = scmp.ge.s32.totalorder %s1665_s14, 4   ;;  %s2012_s15 = smov %s1559_s16 }
 0x4ef   : > { %s2013_s16 = smov %s1563_s17  ;;  %s2014_s17 = smov %s1677_s21 }
 0x4f0   : > { %s2015_s18 = smov %s1665_s14  ;;  %21 = sbr.rel (!%p19_p2) target bundleno = 7 (0x7), region = 93 }
 0x4f5   :  { %1145 = vsyncpa [#allocation3], 1 }
 0x4f6   :  { %1147 = vsyncpa [#allocation3 + $0x1], 1 }
 0x4f7   :  { %1148 = vsyncpa [#allocation6], 1 }
 0x4f8   :  { %1149 = vsyncpa [#allocation9], 1 }
 0x4f9   :  { %1150 = vsyncpa [#allocation4], 1 }
 0x4fa   :  { %1152 = vsyncpa [#allocation4 + $0x1], 1 }

</bundles_post_ra>
